<compile_context>
chip_gen: v7x
topology: tpu7x:2x2x1
jax: 0.10.0
libtpu: 0.0.40
codegen_flags: <defaults>
</compile_context>

<pallas_src>
import numpy as np
import jax
import jax.numpy as jnp
from jax import lax
from jax.experimental import pallas as pl
from jax.experimental.pallas import tpu as pltpu


# ----------------------------------------------------------------------------
# Plain-numpy glue: lattice + coefficient-matrix construction (parameter setup)
# ----------------------------------------------------------------------------
def build_lattice(l: float, alpha: float):
    s3 = np.sqrt(3.0)
    x = np.array([[1.0], [0.0]], dtype=np.complex128)
    y = np.array([[0.0], [1.0]], dtype=np.complex128)
    a1 = s3 * l * x
    a2 = (s3 * x + 3.0 * y) * l / 2.0
    r1 = (a1 + a2) / 3.0
    r2 = (-2.0 * a1 + a2) / 3.0
    r3 = (a1 - 2.0 * a2) / 3.0
    r1h = r1 / np.linalg.norm(r1)
    r2h = r2 / np.linalg.norm(r2)
    r3h = r3 / np.linalg.norm(r3)
    # torch's elementwise (2,1)*(1,2) broadcast == outer product
    r11 = r1h @ r1h.conj().T
    r22 = r2h @ r2h.conj().T
    r33 = r3h @ r3h.conj().T
    return dict(a1=np.real(a1), a2=np.real(a2), r11=r11, r22=r22, r33=r33,
                alpha=alpha)


def bulk_H(c1, s1, c2, s2, lat, omega0, Omega):
    """Mirror of BulkH.forward (perturbation=False) with K1=c1+i s1, K2=c2+i s2."""
    r11, r22, r33 = lat["r11"], lat["r22"], lat["r33"]
    K1 = c1 + 1j * s1
    K2 = c2 + 1j * s2
    sy = np.array([[0.0, -1j], [1j, 0.0]], dtype=np.complex128)
    A0 = r11 + r22 + r33
    L11 = np.block([
        [A0, -(r11 + np.conj(K1) * r22 + np.conj(K2) * r33)],
        [-(r11 + K1 * r22 + K2 * r33), A0],
    ])
    Z2 = np.zeros((2, 2), dtype=np.complex128)
    L12 = np.block([[-2.0 * Omega * sy, Z2], [Z2, -2.0 * Omega * sy]])
    Z4 = np.zeros((4, 4), dtype=np.complex128)
    I4 = np.eye(4, dtype=np.complex128)
    L = omega0 ** 2 * np.block([[L11, L12], [Z4, I4]])
    M = np.block([[Z4, I4], [I4, Z4]])
    H = np.linalg.inv(M) @ L
    return H


def build_coeff_mats(lat, omega0, Omega):
    """H(k) = C0 + c1*Cc1 + s1*Cs1 + c2*Cc2 + s2*Cs2  (affine in the features).

    Returns a single fused (8, 128) float32 basis: lanes [0:64] hold the real
    parts of the flattened 8x8 coefficient matrices, lanes [64:128] the imag
    parts; feature rows 5-7 are zero padding.
    """
    C0 = bulk_H(0.0, 0.0, 0.0, 0.0, lat, omega0, Omega)
    Cc1 = bulk_H(1.0, 0.0, 0.0, 0.0, lat, omega0, Omega) - C0
    Cs1 = bulk_H(0.0, 1.0, 0.0, 0.0, lat, omega0, Omega) - C0
    Cc2 = bulk_H(0.0, 0.0, 1.0, 0.0, lat, omega0, Omega) - C0
    Cs2 = bulk_H(0.0, 0.0, 0.0, 1.0, lat, omega0, Omega) - C0
    C = np.stack([C0, Cc1, Cs1, Cc2, Cs2], axis=0)            # (5, 8, 8) complex128
    c_all = np.zeros((8, 128), np.float32)                    # pad feature dim 5 -> 8
    c_all[:5, :64] = C.real.reshape(5, 64).astype(np.float32)
    c_all[:5, 64:] = C.imag.reshape(5, 64).astype(np.float32)
    return c_all


# ----------------------------------------------------------------------------
# Pallas kernel: lane-dense phases -> (8, tk) feature scratch -> single matmul
# ----------------------------------------------------------------------------
def ribbon_h_kernel(a_ref, k_ref, c_ref, h_ref, feat_ref):
    # a_ref   : SMEM (4,)       = [a1x, a1y, a2x, a2y]  (scalar-prefetched)
    # k_ref   : VMEM (2, tk)    row 0 = kx, row 1 = ky   (lane-dense)
    # c_ref   : VMEM (8, 128)   fused [real | imag] coefficient basis
    # h_ref   : VMEM (tk, 128)  output block (lanes 0:64 real, 64:128 imag)
    # feat_ref: VMEM (8, tk)    feature scratch (one sublane row per feature)
    kx = k_ref[0:1, :]                                   # (1, tk)
    ky = k_ref[1:2, :]                                   # (1, tk)
    ph1 = kx * a_ref[0] + ky * a_ref[1]                  # k . a1  -> (1, tk)
    ph2 = kx * a_ref[2] + ky * a_ref[3]                  # k . a2  -> (1, tk)

    feat_ref[0:1, :] = jnp.ones_like(ph1)
    feat_ref[1:2, :] = jnp.cos(ph1)
    feat_ref[2:3, :] = jnp.sin(ph1)
    feat_ref[3:4, :] = jnp.cos(ph2)
    feat_ref[4:5, :] = jnp.sin(ph2)
    # Explicitly zero the padding rows so correctness never depends on the
    # basis padding being zero.
    feat_ref[5:8, :] = jnp.zeros((3, feat_ref.shape[1]), jnp.float32)

    # Contract the feature axis (axis 0 of both operands): (tk, 128) output.
    h_ref[...] = lax.dot_general(
        feat_ref[...], c_ref[...],
        dimension_numbers=(((0,), (0,)), ((), ())),
        preferred_element_type=jnp.float32)


def ribbon_h(k_pts, a_flat, c_all, *, tk=1024):
    """k_pts: (K, 2) float32; a_flat: (4,) float32; c_all: (8, 128) float32.

    Returns (H_real, H_imag), each (K, 8, 8) float32.
    """
    K = k_pts.shape[0]
    assert tk % 128 == 0, "tk must be a multiple of 128 (lane width)"
    n_blk = pl.cdiv(K, tk)
    Kpad = n_blk * tk

    # Lane-dense (2, Kpad) slab of k-points; padded tail rows are harmless
    # (they are sliced off after the kernel).
    k_rows = jnp.zeros((2, Kpad), jnp.float32)
    k_rows = k_rows.at[:, :K].set(k_pts.astype(jnp.float32).T)

    h_all = pl.pallas_call(
        ribbon_h_kernel,
        out_shape=jax.ShapeDtypeStruct((Kpad, 128), jnp.float32),
        grid_spec=pltpu.PrefetchScalarGridSpec(
            num_scalar_prefetch=1,
            grid=(n_blk,),
            in_specs=[pl.BlockSpec((2, tk), lambda i, a: (0, i)),
                      pl.BlockSpec((8, 128), lambda i, a: (0, 0))],
            out_specs=pl.BlockSpec((tk, 128), lambda i, a: (i, 0)),
            scratch_shapes=[pltpu.VMEM((8, tk), jnp.float32)],
        ),
        compiler_params=pltpu.CompilerParams(
            dimension_semantics=("parallel",)),
    )(a_flat, k_rows, c_all)

    hr = h_all[:K, :64].reshape(K, 8, 8)
    hi = h_all[:K, 64:].reshape(K, 8, 8)
    return hr, hi


# ----------------------------------------------------------------------------
if __name__ == "__main__":
    # Deterministic module parameters (shapes from __init__ / lattice math).
    l = 1.0
    alpha = 0.4
    omega0 = 1.0
    Omega = 0.1          # Ω is a forward-time scalar for RibbonH; folded into C0

    # Small demo path; K deliberately NOT a multiple of the tile to exercise
    # the pl.cdiv + padding path.  tk=128 keeps >=2 grid steps at this size;
    # for long band-structure paths use the default tk=1024.
    K, TK = 300, 128

    lat = build_lattice(l, alpha)
    c_all = build_coeff_mats(lat, omega0, Omega)
    a_flat = np.array([lat["a1"][0, 0], lat["a1"][1, 0],
                       lat["a2"][0, 0], lat["a2"][1, 0]], dtype=np.float32)

    key = jax.random.PRNGKey(0)
    k_pts = jax.random.uniform(key, (K, 2), jnp.float32,
                               minval=-np.pi, maxval=np.pi)

    hr, hi = ribbon_h(k_pts, jnp.asarray(a_flat), jnp.asarray(c_all), tk=TK)
    hr, hi = jax.block_until_ready((hr, hi))

    # Reference (float64, mirrors the torch math exactly) for a sanity check.
    k_np = np.asarray(k_pts, dtype=np.float64)
    a1 = lat["a1"].reshape(2)
    a2 = lat["a2"].reshape(2)
    H_ref = np.stack([
        bulk_H(np.cos(k @ a1), np.sin(k @ a1),
               np.cos(k @ a2), np.sin(k @ a2), lat, omega0, Omega)
        for k in k_np
    ], axis=0)
    H_kernel = np.asarray(hr, np.float64) + 1j * np.asarray(hi, np.float64)
    assert np.allclose(H_kernel, H_ref, atol=1e-4, rtol=1e-4)

    # TODO(synk): RibbonH.forward is an empty stub in the source and the
    # perturbation=True branch of BulkH is not exercised here.
    print("KERNEL_OK")
</pallas_src>

<mosaic_0001>
module attributes {stable_mosaic.version = 11 : i64} {
  func.func @ribbon_h_kernel(%arg0: i32, %arg1: memref<4xf32, #tpu.memory_space<smem>>, %arg2: memref<2x128xf32, #tpu.memory_space<vmem>>, %arg3: memref<8x128xf32, #tpu.memory_space<vmem>>, %arg4: memref<128x128xf32, #tpu.memory_space<vmem>>, %arg5: memref<8x128xf32, #tpu.memory_space<vmem>>) attributes {dimension_semantics = [#tpu.dimension_semantics<parallel>], iteration_bounds = array<i64: 3>, scalar_prefetch = 1 : i64, scratch_operands = 1 : i64, tpu.core_type = #tpu.core_type<tc>, window_params = [{transform_indices = @transform_0, window_bounds = array<i64: 2, 128>}, {pipeline_mode = #tpu.pipeline_mode<synchronous>, transform_indices = @transform_1, window_bounds = array<i64: 8, 128>}, {transform_indices = @transform_2, window_bounds = array<i64: 128, 128>}]} {
    %c0 = arith.constant 0 : index
    %c0_0 = arith.constant 0 : index
    %0 = vector.load %arg2[%c0, %c0_0] : memref<2x128xf32, #tpu.memory_space<vmem>>, vector<1x128xf32>
    %c1 = arith.constant 1 : index
    %c0_1 = arith.constant 0 : index
    %1 = vector.load %arg2[%c1, %c0_1] : memref<2x128xf32, #tpu.memory_space<vmem>>, vector<1x128xf32>
    %c0_2 = arith.constant 0 : index
    %2 = memref.load %arg1[%c0_2] : memref<4xf32, #tpu.memory_space<smem>>
    %3 = vector.broadcast %2 : f32 to vector<1x128xf32>
    %4 = arith.mulf %0, %3 : vector<1x128xf32>
    %c1_3 = arith.constant 1 : index
    %5 = memref.load %arg1[%c1_3] : memref<4xf32, #tpu.memory_space<smem>>
    %6 = vector.broadcast %5 : f32 to vector<1x128xf32>
    %7 = arith.mulf %1, %6 : vector<1x128xf32>
    %8 = arith.addf %4, %7 : vector<1x128xf32>
    %c2 = arith.constant 2 : index
    %9 = memref.load %arg1[%c2] : memref<4xf32, #tpu.memory_space<smem>>
    %10 = vector.broadcast %9 : f32 to vector<1x128xf32>
    %11 = arith.mulf %0, %10 : vector<1x128xf32>
    %c3 = arith.constant 3 : index
    %12 = memref.load %arg1[%c3] : memref<4xf32, #tpu.memory_space<smem>>
    %13 = vector.broadcast %12 : f32 to vector<1x128xf32>
    %14 = arith.mulf %1, %13 : vector<1x128xf32>
    %15 = arith.addf %11, %14 : vector<1x128xf32>
    %cst = arith.constant 1.000000e+00 : f32
    %16 = vector.broadcast %cst : f32 to vector<1x128xf32>
    %c0_4 = arith.constant 0 : index
    %c0_5 = arith.constant 0 : index
    %17 = vector.load %arg5[%c0_4, %c0_5] : memref<8x128xf32, #tpu.memory_space<vmem>>, vector<1x128xf32>
    tpu.vector_store %arg5[%c0_4, %c0_5], %16 {strides = array<i32>} : memref<8x128xf32, #tpu.memory_space<vmem>>, vector<1x128xf32>,
    %18 = math.cos %8 : vector<1x128xf32>
    %c1_6 = arith.constant 1 : index
    %c0_7 = arith.constant 0 : index
    %19 = vector.load %arg5[%c1_6, %c0_7] : memref<8x128xf32, #tpu.memory_space<vmem>>, vector<1x128xf32>
    tpu.vector_store %arg5[%c1_6, %c0_7], %18 {strides = array<i32>} : memref<8x128xf32, #tpu.memory_space<vmem>>, vector<1x128xf32>,
    %20 = math.sin %8 : vector<1x128xf32>
    %c2_8 = arith.constant 2 : index
    %c0_9 = arith.constant 0 : index
    %21 = vector.load %arg5[%c2_8, %c0_9] : memref<8x128xf32, #tpu.memory_space<vmem>>, vector<1x128xf32>
    tpu.vector_store %arg5[%c2_8, %c0_9], %20 {strides = array<i32>} : memref<8x128xf32, #tpu.memory_space<vmem>>, vector<1x128xf32>,
    %22 = math.cos %15 : vector<1x128xf32>
    %c3_10 = arith.constant 3 : index
    %c0_11 = arith.constant 0 : index
    %23 = vector.load %arg5[%c3_10, %c0_11] : memref<8x128xf32, #tpu.memory_space<vmem>>, vector<1x128xf32>
    tpu.vector_store %arg5[%c3_10, %c0_11], %22 {strides = array<i32>} : memref<8x128xf32, #tpu.memory_space<vmem>>, vector<1x128xf32>,
    %24 = math.sin %15 : vector<1x128xf32>
    %c4 = arith.constant 4 : index
    %c0_12 = arith.constant 0 : index
    %25 = vector.load %arg5[%c4, %c0_12] : memref<8x128xf32, #tpu.memory_space<vmem>>, vector<1x128xf32>
    tpu.vector_store %arg5[%c4, %c0_12], %24 {strides = array<i32>} : memref<8x128xf32, #tpu.memory_space<vmem>>, vector<1x128xf32>,
    %cst_13 = arith.constant 0.000000e+00 : f32
    %26 = vector.broadcast %cst_13 : f32 to vector<3x128xf32>
    %c5 = arith.constant 5 : index
    %c0_14 = arith.constant 0 : index
    %27 = vector.load %arg5[%c5, %c0_14] : memref<8x128xf32, #tpu.memory_space<vmem>>, vector<3x128xf32>
    tpu.vector_store %arg5[%c5, %c0_14], %26 {strides = array<i32>} : memref<8x128xf32, #tpu.memory_space<vmem>>, vector<3x128xf32>,
    %c0_15 = arith.constant 0 : index
    %c0_16 = arith.constant 0 : index
    %28 = vector.load %arg5[%c0_15, %c0_16] : memref<8x128xf32, #tpu.memory_space<vmem>>, vector<8x128xf32>
    %c0_17 = arith.constant 0 : index
    %c0_18 = arith.constant 0 : index
    %29 = vector.load %arg3[%c0_17, %c0_18] : memref<8x128xf32, #tpu.memory_space<vmem>>, vector<8x128xf32>
    %cst_19 = arith.constant dense<0.000000e+00> : vector<128x128xf32>
    %30 = tpu.matmul %28, %29, %cst_19 {dimension_numbers = #tpu.dot_dimension_numbers<[0], [0], [1], [1], [0, 1, 1, 1], [], []>} : vector<8x128xf32>, vector<8x128xf32>, vector<128x128xf32> -> vector<128x128xf32>
    %c0_20 = arith.constant 0 : index
    %c0_21 = arith.constant 0 : index
    %31 = vector.load %arg4[%c0_20, %c0_21] : memref<128x128xf32, #tpu.memory_space<vmem>>, vector<128x128xf32>
    tpu.vector_store %arg4[%c0_20, %c0_21], %30 {strides = array<i32>} : memref<128x128xf32, #tpu.memory_space<vmem>>, vector<128x128xf32>,
    return
  }
  func.func @transform_0(%arg0: i32, %arg1: memref<4xf32, #tpu.memory_space<smem>>) -> (i32, i32) {
    %c0_i32 = arith.constant 0 : i32
    %c0_i32_0 = arith.constant 0 : i32
    return %c0_i32, %arg0 : i32, i32
  }
  func.func @transform_1(%arg0: i32, %arg1: memref<4xf32, #tpu.memory_space<smem>>) -> (i32, i32) {
    %c0_i32 = arith.constant 0 : i32
    %c0_i32_0 = arith.constant 0 : i32
    %c0_i32_1 = arith.constant 0 : i32
    return %c0_i32, %c0_i32_0 : i32, i32
  }
  func.func @transform_2(%arg0: i32, %arg1: memref<4xf32, #tpu.memory_space<smem>>) -> (i32, i32) {
    %c0_i32 = arith.constant 0 : i32
    %c0_i32_0 = arith.constant 0 : i32
    return %arg0, %c0_i32 : i32, i32
  }
}

</mosaic_0001>

<bundles_post_ra>
// kernel: tpu_custom_call.1
= control target key start
LH: loop header
LB: loop body
LE: loop exit
PB: predicated region body
PF: predicated region fallthrough
CT: control target
= control target key end

     0   :  { %s1630_s0 = inlined_call_operand.hbm [shape: f32[4], index: 0, kind: input, shape index: {}]   ;;  %s1631_s1 = inlined_call_operand.hbm [shape: f32[2,384], index: 1, kind: input, shape index: {}]   ;;  %s1632_s2 = inlined_call_operand.hbm [shape: f32[8,128], index: 2, kind: input, shape index: {}]   ;;  %s1633_s3 = inlined_call_operand.hbm [shape: f32[384,128], index: 3, kind: output, shape index: {}]  }
   0x1   :  { %s1135_s14 = scalar_lea.hbm %s1630_s0, 16 }
   0x2   :  { %p1136_p0 = scmp.ne.s32.totalorder %s1630_s0, %s1135_s14  ;;  %p1139_p1 = scmp.lt.u32.totalorder %s1135_s14, %s1630_s0 }
   0x4   :  { %p1141_p2 = pnand %p1139_p1, %p1136_p0 }
   0x6   :  { %1144 = shalt.err (!%p1141_p2)  }
   0x7   :  { %s1277_s19 = smov [#allocation4]  }
   0x8   :  { %9 = dma.hbm_to_smem %s1630_s0, 16, %s1277_s19, [#allocation3] }
   0x9   :  { %1247 = dma.done.wait [#allocation3], 16 }
   0xa   :  { %1248 = vsyncadd [#allocation3], 4294967280 }
   0xb   :  { %11 = sfence }
   0xc   :  { %12 = vsyncpa [#allocation6], 0 }
   0xd   :  { %14 = vsyncpa [#allocation6 + $0x1], 0 }
   0xe   :  { %15 = vsyncpa [#allocation9], 0 }
   0xf   :  { %16 = vsyncpa [#allocation7], 0 }
  0x10   :  { %18 = vsyncpa [#allocation7 + $0x1], 0  ;;  %s1323_s22 = smov 0   ;;  %s1325_s23 = smov 0  }
  0x11   :  { %s1327_s24 = smov 0   ;;  %s1329_s25 = smov 0  }
  0x12 LB: > { %s1344_s0 = sadd.s32 4294967295, %s1275_s25   ;;  %s955_s26 = sadd.s32 4294967294, %s1275_s25   ;;  %s1275_s25 = sphi %s1329_s25, %s1656_s25   ;;  %s1271_s24 = sphi %s1327_s24, %s1655_s24   ;;  %s1267_s23 = sphi %s1325_s23, %s1654_s23   ;;  %s1263_s22 = sphi %s1323_s22, %s1653_s22  }
  0x13   : > { %p44_p3 = scmp.ne.s32.totalorder %s1267_s23, %s1263_s22  ;;  %p1634_p4 = scmp.eq.s32.totalorder %s1344_s0, 0 }
  0x14   : > { %p95_p6 = scmp.eq.s32.totalorder %s955_s26, 2  ;;  %p956_p8 = scmp.ge.s32.totalorder %s1275_s25, 1 }
  0x15   : > { %p1353_p7 = por %p1634_p4, %p44_p3  ;;  %p102_p10 = scmp.lt.s32.totalorder %s1275_s25, 4 }
  0x16   : > { %p1358_p9 = por %p95_p6, %p44_p3  ;;  %s1278_s30 = smov [#allocation8]  }
  0x17   : > { %s1637_s27 = scalar_select %p1353_p7, 1, 0 }
  0x18   : > { %s1638_s28 = scalar_select %p1358_p9, 1, 0 }
  0x19   : > { %p1363_p11 = pnand %p956_p8, %p102_p10  ;;  %s115_s4 = sshll.u32 %s1278_s30, 4  ;;  %s116_s4 = int_to_ptr.vmem [resolvable:$true] %s115_s4 }
  0x1a   : > { %s1370_s5 = sadd.s32 1, %s1275_s25   ;;  %s31_s9 = sadd.s32 1, %s1271_s24 }
  0x1b   : > { %s1639_s29 = scalar_select %p1363_p11, 1, 0 }
  0x1c   : > { %p1067_p12 = pneg %p1363_p11  ;;  %s28_s7 = ssub.s32 %s1275_s25, %s1370_s5 }
  0x1d   : > { %p1380_p0 = scmp.eq.s32.totalorder %s28_s7, 0  ;;  %s1145_s12 = scalar_lea.hbm %s1632_s2, 128 }
  0x1e   : > { %p1374_p13 = pnand %p1067_p12, %p1634_p4  ;;  %p1146_p2 = scmp.ne.s32.totalorder %s1632_s2, %s1145_s12 }
  0x1f   : > { %s1641_s8 = scalar_select %p1380_p0, 1, 0 }
  0x20   : > { %p1147_p3 = pneg %p1374_p13  ;;  %p1152_p10 = scmp.lt.u32.totalorder %s1145_s12, %s1632_s2 }
  0x22   : > { %p1148_p6 = pnand %p1147_p3, %p1146_p2 }
  0x24   : > { %p1149_p8 = pneg %p1148_p6 }
  0x26   : > { %p1154_p12 = pnand %p1152_p10, %p1149_p8 }
  0x28   : > { %1157 = shalt.err (!%p1154_p12)
}
  0x29   : > { %s1158_s17 = scalar_lea.vmem %s116_s4, 128  ;;  %p1166_p9 = scmp.lt.s32.totalorder %s116_s4, %s116_s4 }
  0x2a   : > { %p1159_p4 = scmp.ne.s32.totalorder %s116_s4, %s1158_s17  ;;  %p1167_p7 = scmp.lt.s32.totalorder %s1158_s17, %s1158_s17 }
  0x2c   : > { %p1161_p5 = pnand %p1159_p4, %p1147_p3  ;;  %p1168_p11 = por %p1167_p7, %p1166_p9 }
  0x2e   : > { %p1162_p1 = pneg %p1161_p5 }
  0x30   : > { %p1169_p0 = pnand %p1168_p11, %p1162_p1 }
  0x32   : > { %1172 = shalt.err (!%p1169_p0)
}
  0x33   : > { %1070 = dma.hbm_to_vmem [thread:$0]  (!%p1374_p13), %s1632_s2, 128, %s116_s4, [#allocation9]  }
  0x34   : > { %p1642_p4 = scmp.ne.s32.totalorder %s1641_s8, 0  ;;  %p39_p5 = scmp.eq.s32.totalorder %s1275_s25, 0 }
  0x35   : > { %p1643_p7 = scmp.ne.s32.totalorder %s1271_s24, %s1267_s23  ;;  %p1644_p9 = scmp.eq.s32.totalorder %s1344_s0, 2 }
  0x36   : > { %s1406_s20 = scalar_select %p1642_p4, %s1271_s24, %s31_s9  }
  0x37   : > { %p1414_p11 = por %p1644_p9, %p1643_p7  ;;  %p1080_p0 = scmp.lt.s32.totalorder %s1275_s25, 3 }
  0x38   : > { %s126_s26 = sand.u32 1, %s1271_s24   ;;  %p1646_p1 = pmov %p1643_p7 }
  0x39   : > { %s959_s30 = sshll.u32 %s126_s26, 1  ;;  %s960_s6 = sshll.u32 %s1275_s25, 5 }
  0x3a   : > { %p40_p2 = por %p39_p5, %p1646_p1  ;;  %s1427_s4 = scalar_lea.hbm %s1631_s1, %s960_s6 }
  0x3b   : > { %s130_s8 = scalar_lea.vmem [#allocation5], %s959_s30  ;;  %s127_s12 = scalar_lea.sflag [#allocation6], %s126_s26 }
  0x3c   : > { %s137_s9 = sshll.u32 %s130_s8, 4  ;;  %p1429_p13 = pnand %p1080_p0, %p40_p2  ;;  %s1433_s9 = int_to_ptr.vmem [resolvable:$true] %s137_s9 }
  0x3d   : > { %s1173_s13 = scalar_lea.hbm %s1427_s4, 32  ;;  %s1178_s16 = scalar_lea.hbm %s1631_s1, 96 }
  0x3e   : > { %p1174_p3 = scmp.ne.s32.totalorder %s1427_s4, %s1173_s13  ;;  %p1175_p6 = pneg %p1429_p13 }
  0x3f   : > { %p1179_p12 = scmp.lt.u32.totalorder %s1427_s4, %s1631_s1  ;;  %p1180_p4 = scmp.lt.u32.totalorder %s1178_s16, %s1173_s13 }
  0x40   : > { %p1176_p8 = pnand %p1175_p6, %p1174_p3  ;;  %p1182_p7 = scmp.lt.u32.totalorder %s1173_s13, %s1427_s4 }
  0x41   : > { %p1181_p5 = por %p1180_p4, %p1179_p12 }
  0x42   : > { %p1177_p10 = pneg %p1176_p8 }
  0x43   : > { %p1183_p9 = por %p1182_p7, %p1181_p5 }
  0x45   : > { %p1184_p0 = pnand %p1183_p9, %p1177_p10 }
  0x47   : > { %1187 = shalt.err (!%p1184_p0)
}
  0x48   : > { %s1188_s19 = scalar_lea.vmem %s1433_s9, 32  ;;  %s1279_s26 = smov [#allocation5]  }
  0x49   : > { %p1189_p1 = scmp.ne.s32.totalorder %s1433_s9, %s1188_s19  ;;  %s1193_s30 = sshll.u32 %s1279_s26, 4  ;;  %s1194_s30 = int_to_ptr.vmem [resolvable:$false] %s1193_s30 }
  0x4a   : > { %s1195_s6 = scalar_lea.vmem %s1194_s30, 64  ;;  %p1196_p8 = scmp.lt.s32.totalorder %s1433_s9, %s1194_s30 }
  0x4b   : > { %p1191_p2 = pnand %p1189_p1, %p1175_p6  ;;  %p1197_p12 = scmp.lt.s32.totalorder %s1195_s6, %s1188_s19 }
  0x4d   : > { %p1192_p3 = pneg %p1191_p2  ;;  %p1198_p4 = por %p1197_p12, %p1196_p8 }
  0x4f   : > { %p1199_p5 = pnand %p1198_p4, %p1192_p3 }
  0x51   : > { %1202 = shalt.err (!%p1199_p5)
}
  0x52   : > { %1074 = dma.hbm_to_vmem [thread:$0]  (!%p1429_p13), %s1427_s4, 32, %s1433_s9, %s127_s12  }
  0x53   : > { %p1648_p10 = scmp.ne.s32.totalorder %s1639_s29, 0 }
  0x54   : > { %s1463_s7 = sand.u32 (!%p1648_p10), 1, %s1267_s23   ;;  %p1649_p6 = scmp.ne.s32.totalorder (!%p1648_p10), %s1637_s27, 0 }
  0x55   : > { %146 = sbr.rel (%p1648_p10) target bundleno = 621 (0x26d), region = 28  ;;  %s962_s10 = sshll.u32 (!%p1648_p10), %s1463_s7, 1 }
  0x56   : > { %s149_s8 = scalar_lea.sflag (!%p1648_p10), [#allocation6], %s1463_s7  ;;  %s152_s13 = scalar_lea.vmem (!%p1648_p10), [#allocation5], %s962_s10 }
  0x5c   : > { %1250 = dma.done.wait (%p1649_p6), %s149_s8, 32  }
  0x5d   : > { %1252 = vsyncadd (%p1649_p6), %s149_s8, 4294967264  ;;  %p1650_p7 = scmp.eq.s32.totalorder %s1344_s0, 0 }
  0x5f   : > { %1254 = dma.done.wait (%p1650_p7), [#allocation9], 128   ;;  %p1651_p13 = pmov %p1650_p7 }
  0x60   : > { %s180_s29 = sld [smem:[#allocation4]]  ;;  %s965_s4 = sld [smem:[#allocation4 + $0x1]]  ;;  %v1280_v0 = vmov 1.0   ;;  %v1281_v1 = vmov 0.0   ;;  %v178_v2 = vld [vmem:[%s152_s13] sm:$0x1] }
  0x61   : > { %1256 = vsyncadd (%p1651_p13), [#allocation9], 4294967168  ;;  %194 = vst [vmem:[#allocation2] sm:$0x1] %v1280_v0  ;;  %s966_s9 = sld [smem:[#allocation4 + $0x2]]  ;;  %s967_s11 = sld [smem:[#allocation4 + $0x3]] }
  0x62   : > { %613 = vst [vmem:[#allocation2 + $0x5] sm:$0x7] %v1281_v1  ;;  %v179_v3 = vld [vmem:[%s152_s13 + $0x1] sm:$0x1]  ;;  %v1282_v36 = vmov 683565275  }
  0x63   : > { %v1283_v38 = vmov 2475754826   ;;  %v1284_v40 = vmov 2131351028   ;;  %v1285_v42 = vmov 2102212464  }
  0x64   : > { %v1286_v44 = vmov 920167782   ;;  %v1287_v52 = vmov 1326507024   ;;  %s964_s27 = sshll.u32 %s1463_s7, 7  ;;  %s1005_s14 = sshll.u32 %s1344_s0, 11 }
  0x65   : > { %s1562_s12 = scalar_lea.vmem [#allocation10], %s964_s27  ;;  %s1583_s18 = scalar_lea.hbm %s1633_s3, %s1005_s14 }
  0x66   : > { %v181_v4 = vstv %s180_s29  ;;  %v184_v5 = vstv %s965_s4  ;;  %s872_s15 = sshll.u32 %s1562_s12, 4  ;;  %s859_s19 = scalar_lea.sflag [#allocation7], %s1463_s7  ;;  %s1585_s15 = int_to_ptr.vmem [resolvable:$true] %s872_s15 }
  0x67   : > { %v182_v6 = vmul.f32 %v181_v4, %v178_v2  ;;  %v185_v7 = vmul.f32 %v184_v5, %v179_v3  ;;  %v188_v8 = vstv %s966_s9  ;;  %v191_v9 = vstv %s967_s11  ;;  %s1203_s26 = scalar_lea.vmem %s1585_s15, 2048  ;;  %s1288_s0 = smov [#allocation10]  }
  0x68   : > { %v189_v10 = vmul.f32 %v188_v8, %v178_v2  ;;  %v192_v11 = vmul.f32 %v191_v9, %v179_v3  ;;  %p1204_p9 = scmp.ne.s32.totalorder %s1585_s15, %s1203_s26  ;;  %s1207_s30 = sshll.u32 %s1288_s0, 4  ;;  %s1208_s30 = int_to_ptr.vmem [resolvable:$false] %s1207_s30 }
  0x69   : > { %v1475_v12 = vadd.f32 %v185_v7, %v182_v6  ;;  %s1209_s6 = scalar_lea.vmem %s1208_s30, 4096  ;;  %p1210_p2 = scmp.lt.s32.totalorder %s1585_s15, %s1208_s30 }
  0x6a   : > { %v1477_v13 = vadd.f32 %v192_v11, %v189_v10  ;;  %p1205_p0 = pnand %p1204_p9, %p1414_p11  ;;  %p1211_p3 = scmp.lt.s32.totalorder %s1209_s6, %s1203_s26 }
  0x6b   : > { %v195_v14 = vand.u32 2147483647, %v1475_v12  ;;  %v198_v15 = vand.u32 2139095040, %v1475_v12  ;;  %vm197_vm14 = vcmp.lt.s32.totalorder %v1475_v12, 0 }
  0x6c   : > { %v404_v16 = vand.u32 2147483647, %v1477_v13  ;;  %v407_v17 = vand.u32 2139095040, %v1477_v13  ;;  %p1206_p1 = pneg %p1205_p0  ;;  %p1212_p8 = por %p1211_p3, %p1210_p2 }
  0x6d   : > { %v199_v18 = vshrl.u32 %v198_v15, 23  ;;  %v202_v19 = vand.u32 8388607, %v195_v14  ;;  %vm196_vm15 = vcmp.le.f32.partialorder %v195_v14, 0.7853982 }
  0x6e   : > { %v408_v20 = vshrl.u32 %v407_v17, 23  ;;  %v411_v21 = vand.u32 8388607, %v404_v16  ;;  %p1213_p12 = pnand %p1212_p8, %p1206_p1 }
  0x6f   : > { %v968_v22 = vadd.s32 4294967169, %v199_v18  ;;  %v203_v25 = vor.u32 8388608, %v202_v19 }
  0x70   : > { %v976_v23 = vadd.s32 4294967169, %v408_v20  ;;  %v412_v26 = vor.u32 8388608, %v411_v21 }
  0x71   : > { %v205_v24 = vadd.s32 1, %v968_v22  ;;  %v1487_v32 = vshll.u32 %v203_v25, 8 }
  0x72   : > { %v414_v27 = vadd.s32 1, %v976_v23  ;;  %v1489_v34 = vshll.u32 %v412_v26, 8 }
  0x73   : > { %vm206_vm0 = vcmp.gt.s32.totalorder %v205_v24, 0 }
  0x74   : > { %v207_v28 = vsel %vm206_vm0, %v205_v24, 0  ;;  %vm415_vm1 = vcmp.gt.s32.totalorder %v414_v27, 0  ;;  %vm406_vm0 = vcmp.lt.s32.totalorder %v1477_v13, 0 }
  0x75   : > { %v208_v29 = vshrl.u32 %v207_v28, 5  ;;  %v209_v30 = vand.u32 31, %v207_v28  ;;  %v416_v31 = vsel %vm415_vm1, %v414_v27, 0  ;;  %vm405_vm1 = vcmp.le.f32.partialorder %v404_v16, 0.7853982 }
  0x76   : > { %v418_v33 = vand.u32 31, %v416_v31  ;;  %v1491_v46 = vshrl.u32 %v416_v31, 5 }
  0x77   : > { %v210_v35 = vsub.s32 32, %v209_v30  ;;  %v212_v37 = vshll.u32 %v1282_v36, %v209_v30  ;;  %v215_v39 = vshll.u32 %v1283_v38, %v209_v30  ;;  %v218_v41 = vshll.u32 %v1284_v40, %v209_v30 }
  0x78   : > { %v221_v43 = vshll.u32 %v1285_v42, %v209_v30  ;;  %v224_v45 = vshll.u32 %v1286_v44, %v209_v30  ;;  %vm227_vm2 = vcmp.lt.s32.totalorder %v208_v29, 1  ;;  %vm228_vm3 = vcmp.lt.s32.totalorder %v208_v29, 2 }
  0x79   : > { %v211_v47 = vshrl.u32 %v1282_v36, %v210_v35  ;;  %v213_v48 = vshrl.u32 %v1283_v38, %v210_v35  ;;  %v216_v49 = vshrl.u32 %v1284_v40, %v210_v35  ;;  %v219_v50 = vshrl.u32 %v1285_v42, %v210_v35 }
  0x7a   : > { %v222_v51 = vshrl.u32 %v1286_v44, %v210_v35  ;;  %v225_v53 = vshrl.u32 %v1287_v52, %v210_v35  ;;  %vm230_vm4 = vcmp.lt.s32.totalorder %v208_v29, 4  ;;  %v419_v57 = vsub.s32 32, %v418_v33 }
  0x7b   : > { %v214_v54 = vor.u32 %v213_v48, %v212_v37  ;;  %v217_v55 = vor.u32 %v216_v49, %v215_v39  ;;  %v220_v56 = vor.u32 %v219_v50, %v218_v41  ;;  %vm229_vm5 = vcmp.lt.s32.totalorder %v208_v29, 3 }
  0x7c   : > { %v223_v58 = vor.u32 %v222_v51, %v221_v43  ;;  %v226_v59 = vor.u32 %v225_v53, %v224_v45  ;;  %v421_v60 = vshll.u32 %v1282_v36, %v418_v33  ;;  %v424_v4 = vshll.u32 %v1283_v38, %v418_v33 }
  0x7d   : > { %v231_v61 = vsel %vm227_vm2, %v211_v47, %v214_v54  ;;  %v232_v62 = vsel %vm230_vm4, %v220_v56, 2102212464  ;;  %v235_v63 = vsel %vm227_vm2, %v214_v54, %v217_v55  ;;  %v239_v0 = vsel %vm227_vm2, %v217_v55, %v220_v56 }
  0x7e   : > { %v233_v1 = vsel %vm229_vm5, %v217_v55, %v232_v62  ;;  %v236_v2 = vsel %vm230_vm4, %v223_v58, 920167782  ;;  %v240_v3 = vsel %vm230_vm4, %v226_v59, 1326507024  ;;  %v420_v7 = vshrl.u32 %v1282_v36, %v419_v57 }
  0x7f   : > { %v237_v5 = vsel %vm229_vm5, %v220_v56, %v236_v2  ;;  %v241_v6 = vsel %vm229_vm5, %v223_v58, %v240_v3  ;;  %v422_v8 = vshrl.u32 %v1283_v38, %v419_v57  ;;  %v234_v9 = vsel %vm228_vm3, %v231_v61, %v233_v1 }
  0x80   : > { %v238_v10 = vsel %vm228_vm3, %v235_v63, %v237_v5  ;;  %v242_v11 = vsel %vm228_vm3, %v239_v0, %v241_v6  ;;  %v425_v15 = vshrl.u32 %v1284_v40, %v419_v57  ;;  %v427_v23 = vshll.u32 %v1284_v40, %v418_v33 }
  0x81   : > { %v1500_v17 = vmul.u32.u64.low %v1487_v32, %v242_v11  ;;  %v1501_v18 = vmul.u32.u64.high %v1487_v32, %v242_v11, %v1500_v17  ;;  %v1504_v19 = vmul.u32.u64.low %v1487_v32, %v238_v10  ;;  %v1505_v20 = vmul.u32.u64.high %v1487_v32, %v238_v10, %v1504_v19 }
  0x82   : > { %v423_v21 = vor.u32 %v422_v8, %v421_v60  ;;  %v426_v22 = vor.u32 %v425_v15, %v424_v4  ;;  %v428_v24 = vshrl.u32 %v1285_v42, %v419_v57  ;;  %v430_v25 = vshll.u32 %v1285_v42, %v418_v33 }
  0x83   : > { %v431_v26 = vshrl.u32 %v1286_v44, %v419_v57  ;;  %v433_v27 = vshll.u32 %v1286_v44, %v418_v33  ;;  %v434_v28 = vshrl.u32 %v1287_v52, %v419_v57  ;;  %v250_v29 = vmul.u32 %v1487_v32, %v234_v9 }
  0x84   : > { %v429_v30 = vor.u32 %v428_v24, %v427_v23  ;;  %vm436_vm6 = vcmp.lt.s32.totalorder %v1491_v46, 1  ;;  %vm437_vm7 = vcmp.lt.s32.totalorder %v1491_v46, 2  ;;  %vm252_vm8 = vc.u32 %v1501_v18, %v1504_v19 }
  0x85   : > { %v253_v31 = vadd.s32 1, %v1505_v20  ;;  %v432_v35 = vor.u32 %v431_v26, %v430_v25  ;;  %vm438_vm9 = vcmp.lt.s32.totalorder %v1491_v46, 3  ;;  %v435_v36 = vor.u32 %v434_v28, %v433_v27 }
  0x86   : > { %vm439_vm10 = vcmp.lt.s32.totalorder %v1491_v46, 4  ;;  %v440_v37 = vsel %vm436_vm6, %v420_v7, %v423_v21  ;;  %v444_v33 = vsel %vm436_vm6, %v423_v21, %v426_v22  ;;  %v448_v40 = vsel %vm436_vm6, %v426_v22, %v429_v30 }
  0x87   : > { %v254_v38 = vsel %vm252_vm8, %v253_v31, %v1505_v20  ;;  %v441_v32 = vsel %vm439_vm10, %v429_v30, 2102212464  ;;  %v445_v39 = vsel %vm439_vm10, %v432_v35, 920167782  ;;  %v449_v44 = vsel %vm439_vm10, %v435_v36, 1326507024 }
  0x88   : > { %v255_v41 = vadd.s32 %v254_v38, %v250_v29  ;;  %v442_v42 = vsel %vm438_vm9, %v426_v22, %v441_v32  ;;  %v446_v43 = vsel %vm438_vm9, %v429_v30, %v445_v39  ;;  %v450_v48 = vsel %vm438_vm9, %v432_v35, %v449_v44 }
  0x89   : > { %v443_v45 = vsel %vm437_vm7, %v440_v37, %v442_v42  ;;  %v447_v47 = vsel %vm437_vm7, %v444_v33, %v446_v43  ;;  %v451_v50 = vsel %vm437_vm7, %v448_v40, %v450_v48  ;;  %v251_v5 = vadd.s32 %v1504_v19, %v1501_v18 }
  0x8a   : > { %v256_v49 = vadd.s32 536870912, %v255_v41  ;;  %v1522_v51 = vmul.u32.u64.low %v1489_v34, %v447_v47  ;;  %v1523_v52 = vmul.u32.u64.high %v1489_v34, %v447_v47, %v1522_v51  ;;  %v459_v56 = vmul.u32 %v1489_v34, %v443_v45 }
  0x8b   : > { %v1526_v53 = vmul.u32.u64.low %v1489_v34, %v451_v50  ;;  %v1527_v54 = vmul.u32.u64.high %v1489_v34, %v451_v50, %v1526_v53  ;;  %vm287_vm8 = vweird.f32 %v1475_v12 }
  0x8c   : > { %v257_v55 = vshrl.u32 %v256_v49, 30  ;;  %v462_v58 = vadd.s32 1, %v1523_v52 }
  0x8d   : > { %vm461_vm11 = vc.u32 %v1527_v54, %v1522_v51  ;;  %v460_v25 = vadd.s32 %v1522_v51, %v1527_v54 }
  0x8e   : > { %v258_v57 = vshll.u32 %v257_v55, 30  ;;  %v463_v46 = vsel %vm461_vm11, %v462_v58, %v1523_v52  ;;  %v281_v18 = vsub.s32 4, %v257_v55 }
  0x8f   : > { %v464_v60 = vadd.s32 %v463_v46, %v459_v56 }
  0x90   : > { %v259_v59 = vsub.s32 %v255_v41, %v258_v57  ;;  %v282_v37 = vsel %vm197_vm14, %v281_v18, %v257_v55 }
  0x91   : > { %v465_v62 = vadd.s32 536870912, %v464_v60  ;;  %v284_v40 = vsel %vm196_vm15, 0, %v282_v37 }
  0x92   : > { %v261_v61 = vsub.s32 0, %v259_v59  ;;  %v392_v45 = vadd.s32 3, %v284_v40  ;;  %v288_v49 = vand.u32 3, %v284_v40 }
  0x93   : > { %v466_v0 = vshrl.u32 %v465_v62, 30 }
  0x94   : > { %v969_v63 = vmin.u32 %v261_v61, %v259_v59  ;;  %v393_v50 = vand.u32 3, %v392_v45  ;;  %vm293_vm2 = vcmp.eq.s32.totalorder %v288_v49, 2  ;;  %vm290_vm4 = vcmp.eq.s32.totalorder %v288_v49, 0 }
  0x95   : > { %v467_v2 = vshll.u32 %v466_v0, 30  ;;  %v490_v44 = vsub.s32 4, %v466_v0  ;;  %vm289_vm6 = vcmp.lt.s32.totalorder %v288_v49, 2 }
  0x96   : > { %v263_v1 = vclz %v969_v63  ;;  %vm398_vm3 = vcmp.eq.s32.totalorder %v393_v50, 2  ;;  %vm395_vm5 = vcmp.eq.s32.totalorder %v393_v50, 0  ;;  %vm394_vm7 = vcmp.lt.s32.totalorder %v393_v50, 2 }
  0x97   : > { %v468_v4 = vsub.s32 %v464_v60, %v467_v2  ;;  %v491_v48 = vsel %vm406_vm0, %v490_v44, %v466_v0 }
  0x98   : > { %v970_v3 = vadd.s32 4294967294, %v263_v1  ;;  %v493_v53 = vsel %vm405_vm1, 0, %v491_v48 }
  0x99   : > { %v470_v6 = vsub.s32 0, %v468_v4  ;;  %v601_v57 = vadd.s32 3, %v493_v53  ;;  %v497_v63 = vand.u32 3, %v493_v53 }
  0x9a   : > { %vm971_vm12 = vcmp.lt.s32.totalorder %v970_v3, 0 }
  0x9b   : > { %v266_v34 = vsel %vm971_vm12, 0, %v970_v3  ;;  %v977_v10 = vmin.u32 %v470_v6, %v468_v4  ;;  %v602_v0 = vand.u32 3, %v601_v57  ;;  %vm502_vm9 = vcmp.eq.s32.totalorder %v497_v63, 2 }
  0x9c   : > { %v267_v7 = vsub.s32 32, %v266_v34  ;;  %v268_v8 = vshll.u32 %v259_v59, %v266_v34  ;;  %v271_v9 = vsub.s32 4294967266, %v266_v34  ;;  %vm499_vm11 = vcmp.eq.s32.totalorder %v497_v63, 0 }
  0x9d   : > { %v472_v17 = vclz %v977_v10  ;;  %vm607_vm10 = vcmp.eq.s32.totalorder %v602_v0, 2  ;;  %vm604_vm12 = vcmp.eq.s32.totalorder %v602_v0, 0 }
  0x9e   : > { %v269_v11 = vshrl.u32 %v251_v5, %v267_v7  ;;  %v272_v15 = vadd.s32 127, %v271_v9 }
  0x9f   : > { %v978_v22 = vadd.s32 4294967294, %v472_v17 }
  0xa0   : > { %v270_v20 = vor.u32 %v269_v11, %v268_v8  ;;  %v273_v21 = vshll.u32 %v272_v15, 23 }
  0xa1   : > { %vm979_vm13 = vcmp.lt.s32.totalorder %v978_v22, 0 }
  0xa2   : > { %v274_v23 = vor.u32 4788187, %v273_v21  ;;  %v277_v24 = vcvt.s32.f32 %v270_v20  ;;  %v475_v19 = vsel %vm979_vm13, 0, %v978_v22  ;;  %vm498_vm13 = vcmp.lt.s32.totalorder %v497_v63, 2  ;;  %v615_v20 = vld [vmem:[#allocation8] sm:$0xff] }
  0xa3   : > { %v476_v27 = vsub.s32 32, %v475_v19  ;;  %v477_v28 = vshll.u32 %v468_v4, %v475_v19  ;;  %v480_v29 = vsub.s32 4294967266, %v475_v19  ;;  %1023 = vmatprep.subr.mxu0 %v615_v20  ;;  %1049 = vmatprep.subr.mxu1 %v615_v20 }
  0xa4   : > { %v275_v26 = vand.u32 2147483647, %v274_v23  ;;  %1024 = vmatpush3.msra.mxu0 %v615_v20  ;;  %1050 = vmatpush3.msra.mxu1 %v615_v20 }
  0xa5   : > { %v478_v31 = vshrl.u32 %v460_v25, %v476_v27  ;;  %v481_v35 = vadd.s32 127, %v480_v29 }
  0xa6   : > { %v278_v30 = vmul.f32 %v277_v24, %v275_v26 }
  0xa7   : > { %v479_v33 = vor.u32 %v478_v31, %v477_v28  ;;  %v482_v38 = vshll.u32 %v481_v35, 23 }
  0xa8   : > { %v279_v36 = vxor.u32 2147483648, %v278_v30 }
  0xa9   : > { %v483_v41 = vor.u32 4788187, %v482_v38  ;;  %v486_v42 = vcvt.s32.f32 %v479_v33 }
  0xaa   : > { %v280_v32 = vsel %vm197_vm14, %v279_v36, %v278_v30  ;;  %vm603_vm14 = vcmp.lt.s32.totalorder %v602_v0, 2 }
  0xab   : > { %v283_v39 = vsel %vm196_vm15, %v1475_v12, %v280_v32  ;;  %v484_v43 = vand.u32 2147483647, %v483_v41  ;;  %vm496_vm15 = vweird.f32 %v1477_v13 }
  0xac   : > { %1127 = vcosq.f32 %v283_v39 }
  0xad   : > { %1129 = vsinq.f32 %v283_v39  ;;  %v487_v47 = vmul.f32 %v486_v42, %v484_v43 }
  0xaf   : > { %v488_v14 = vxor.u32 2147483648, %v487_v47 }
  0xb1   : > { %v489_v51 = vsel %vm406_vm0, %v488_v14, %v487_v47  ;;  %vm648_vm0 = vcmask 64512  }
  0xb2   : > { %v492_v52 = vsel %vm405_vm1, %v1477_v13, %v489_v51 }
  0xb3   : > { %1131 = vcosq.f32 %v492_v52 }
  0xb4   : > { %1133 = vsinq.f32 %v492_v52 }
  0xb6   : > { %v1128_v54 = vpop.eup %1127 }
  0xb7   : > { %v1130_v55 = vpop.eup %1129  ;;  %v294_v56 = vxor.u32 2147483648, %v1128_v54 }
  0xb8   : > { %v291_v16 = vxor.u32 2147483648, %v1130_v55 }
  0xb9   : > { %v295_v58 = vsel %vm293_vm2, %v294_v56, %v1130_v55  ;;  %v400_v59 = vsel %vm398_vm3, %v294_v56, %v1130_v55 }
  0xba   : > { %v292_v46 = vsel %vm290_vm4, %v1128_v54, %v291_v16  ;;  %v397_v60 = vsel %vm395_vm5, %v1128_v54, %v291_v16 }
  0xbb   : > { %v296_v61 = vsel %vm289_vm6, %v292_v46, %v295_v58  ;;  %v401_v62 = vsel %vm394_vm7, %v397_v60, %v400_v59 }
  0xbc   : > { %v297_v1 = vsel %vm287_vm8, nan, %v296_v61  ;;  %v402_v2 = vsel %vm287_vm8, nan, %v401_v62 }
  0xbd   : > { %298 = vst [vmem:[#allocation2 + $0x1] sm:$0x1] %v297_v1  ;;  %403 = vst [vmem:[#allocation2 + $0x2] sm:$0x1] %v402_v2  ;;  %v1132_v3 = vpop.eup %1131 }
  0xbe   : > { %v1134_v4 = vpop.eup %1133  ;;  %v503_v5 = vxor.u32 2147483648, %v1132_v3 }
  0xbf   : > { %v500_v12 = vxor.u32 2147483648, %v1134_v4 }
  0xc0   : > { %v504_v34 = vsel %vm502_vm9, %v503_v5, %v1134_v4  ;;  %v609_v6 = vsel %vm607_vm10, %v503_v5, %v1134_v4 }
  0xc1   : > { %v501_v7 = vsel %vm499_vm11, %v1132_v3, %v500_v12  ;;  %v606_v8 = vsel %vm604_vm12, %v1132_v3, %v500_v12 }
  0xc2   : > { %v505_v9 = vsel %vm498_vm13, %v501_v7, %v504_v34  ;;  %v610_v10 = vsel %vm603_vm14, %v606_v8, %v609_v6 }
  0xc3   : > { %v506_v11 = vsel %vm496_vm15, nan, %v505_v9  ;;  %v611_v15 = vsel %vm496_vm15, nan, %v610_v10 }
  0xc4   : > { %507 = vst [vmem:[#allocation2 + $0x3] sm:$0x1] %v506_v11  ;;  %612 = vst [vmem:[#allocation2 + $0x4] sm:$0x1] %v611_v15 }
  0xcb   : > { %v614_v17 = vld [vmem:[#allocation2] sm:$0xff] }
  0xcc   : > { %616 = vxpose.xlu0.b32.start.end [1/1] (short) %v614_v17, 128 }
 0x14c   : > { %v632_v21 = vpop.trf.xlu0 }
 0x14d   : > { %1025 = vmatprep.mubr.msk.f32.mxu0 %vm648_vm0, %v632_v21 }
 0x150   : > { %v633_v13 = vpop.trf.xlu0 }
 0x151   : > { %1026 = vmatmul.mubr.msk.f32.vlgmr.msra.gmra.mrb[0].mxu0 %vm648_vm0, %v633_v13 }
 0x154   : > { %v634_v22 = vpop.trf.xlu0 }
 0x155   : > { %1028 = vmatprep.mubr.msk.f32.mxu0 %vm648_vm0, %v634_v22 }
 0x158   : > { %v635_v23 = vpop.trf.xlu0 }
 0x159   : > { %1029 = vmatmul.mubr.msk.f32.gmra.mrb[2].mxu0 %vm648_vm0, %v635_v23 }
 0x15c   : > { %v636_v24 = vpop.trf.xlu0 }
 0x15d   : > { %1031 = vmatprep.mubr.msk.f32.mxu0 %vm648_vm0, %v636_v24 }
 0x160   : > { %v637_v25 = vpop.trf.xlu0 }
 0x161   : > { %1032 = vmatmul.mubr.msk.f32.gmra.mrb[4].mxu0 %vm648_vm0, %v637_v25 }
 0x164   : > { %v638_v26 = vpop.trf.xlu0 }
 0x165   : > { %1034 = vmatprep.mubr.msk.f32.mxu0 %vm648_vm0, %v638_v26 }
 0x168   : > { %v639_v18 = vpop.trf.xlu0 }
 0x169   : > { %1035 = vmatmul.mubr.msk.f32.gmra.mrb[6].mxu0 %vm648_vm0, %v639_v18 }
 0x16c   : > { %v640_v19 = vpop.trf.xlu0 }
 0x16d   : > { %1037 = vmatprep.mubr.msk.f32.mxu1 %vm648_vm0, %v640_v19 }
 0x170   : > { %v641_v27 = vpop.trf.xlu0 }
 0x171   : > { %1038 = vmatmul.mubr.msk.f32.vlgmr.msra.gmra.mrb[0].mxu1 %vm648_vm0, %v641_v27 }
 0x174   : > { %v642_v28 = vpop.trf.xlu0 }
 0x175   : > { %1040 = vmatprep.mubr.msk.f32.mxu1 %vm648_vm0, %v642_v28 }
 0x178   : > { %v643_v29 = vpop.trf.xlu0 }
 0x179   : > { %1041 = vmatmul.mubr.msk.f32.gmra.mrb[2].mxu1 %vm648_vm0, %v643_v29 }
 0x17c   : > { %v644_v30 = vpop.trf.xlu0 }
 0x17d   : > { %1043 = vmatprep.mubr.msk.f32.mxu1 %vm648_vm0, %v644_v30 }
 0x180   : > { %v645_v31 = vpop.trf.xlu0 }
 0x181   : > { %1044 = vmatmul.mubr.msk.f32.gmra.mrb[4].mxu1 %vm648_vm0, %v645_v31 }
 0x184   : > { %v646_v35 = vpop.trf.xlu0 }
 0x185   : > { %1046 = vmatprep.mubr.msk.f32.mxu1 %vm648_vm0, %v646_v35 }
 0x188   : > { %v647_v36 = vpop.trf.xlu0 }
 0x189   : > { %1047 = vmatmul.mubr.msk.f32.gmra.mrb[6].mxu1 %vm648_vm0, %v647_v36 }
 0x224   : > { %v1027_v37 = vpop.f32.mrb[0].mxu0 }
 0x225   : > { %843 = vst [vmem:[%s1562_s12 + $0x8] sm:$0xff] %v1027_v37  ;;  %v763_v33 = vpop.f32.mrb[1].mxu0 }
 0x226   : > { %842 = vst [vmem:[%s1562_s12] sm:$0xff] %v763_v33 }
 0x22c   : > { %v1030_v38 = vpop.f32.mrb[2].mxu0 }
 0x22d   : > { %845 = vst [vmem:[%s1562_s12 + $0x18] sm:$0xff] %v1030_v38  ;;  %v773_v32 = vpop.f32.mrb[3].mxu0 }
 0x22e   : > { %844 = vst [vmem:[%s1562_s12 + $0x10] sm:$0xff] %v773_v32 }
 0x234   : > { %v1033_v39 = vpop.f32.mrb[4].mxu0 }
 0x235   : > { %847 = vst [vmem:[%s1562_s12 + $0x28] sm:$0xff] %v1033_v39  ;;  %v783_v40 = vpop.f32.mrb[5].mxu0 }
 0x236   : > { %846 = vst [vmem:[%s1562_s12 + $0x20] sm:$0xff] %v783_v40 }
 0x23c   : > { %v1036_v41 = vpop.f32.mrb[6].mxu0 }
 0x23d   : > { %849 = vst [vmem:[%s1562_s12 + $0x38] sm:$0xff] %v1036_v41  ;;  %v793_v42 = vpop.f32.mrb[7].mxu0 }
 0x23e   : > { %848 = vst [vmem:[%s1562_s12 + $0x30] sm:$0xff] %v793_v42 }
 0x244   : > { %v1039_v43 = vpop.f32.mrb[0].mxu1 }
 0x245   : > { %851 = vst [vmem:[%s1562_s12 + $0x48] sm:$0xff] %v1039_v43  ;;  %v803_v44 = vpop.f32.mrb[1].mxu1 }
 0x246   : > { %850 = vst [vmem:[%s1562_s12 + $0x40] sm:$0xff] %v803_v44 }
 0x24c   : > { %v1042_v45 = vpop.f32.mrb[2].mxu1 }
 0x24d   : > { %853 = vst [vmem:[%s1562_s12 + $0x58] sm:$0xff] %v1042_v45  ;;  %v813_v47 = vpop.f32.mrb[3].mxu1 }
 0x24e   : > { %852 = vst [vmem:[%s1562_s12 + $0x50] sm:$0xff] %v813_v47 }
 0x254   : > { %v1045_v14 = vpop.f32.mrb[4].mxu1 }
 0x255   : > { %855 = vst [vmem:[%s1562_s12 + $0x68] sm:$0xff] %v1045_v14  ;;  %v823_v48 = vpop.f32.mrb[5].mxu1 }
 0x256   : > { %854 = vst [vmem:[%s1562_s12 + $0x60] sm:$0xff] %v823_v48 }
 0x25c   : > { %v1048_v49 = vpop.f32.mrb[6].mxu1 }
 0x25d   : > { %857 = vst [vmem:[%s1562_s12 + $0x78] sm:$0xff] %v1048_v49  ;;  %v833_v50 = vpop.f32.mrb[7].mxu1 }
 0x25e   : > { %856 = vst [vmem:[%s1562_s12 + $0x70] sm:$0xff] %v833_v50 }
 0x25f   : > { %1216 = shalt.err (!%p1213_p12)
}
 0x260   : > { %s1217_s10 = scalar_lea.hbm %s1583_s18, 2048  ;;  %s1221_s29 = scalar_lea.hbm %s1633_s3, 6144 }
 0x261   : > { %p1218_p4 = scmp.ne.s32.totalorder %s1583_s18, %s1217_s10  ;;  %p1222_p6 = scmp.lt.u32.totalorder %s1583_s18, %s1633_s3 }
 0x262   : > { %p1223_p7 = scmp.lt.u32.totalorder %s1221_s29, %s1217_s10  ;;  %p1225_p9 = scmp.lt.u32.totalorder %s1217_s10, %s1583_s18 }
 0x263   : > { %p1219_p5 = pnand %p1218_p4, %p1414_p11 }
 0x264   : > { %p1224_p13 = por %p1223_p7, %p1222_p6 }
 0x265   : > { %p1220_p10 = pneg %p1219_p5 }
 0x266   : > { %p1226_p0 = por %p1225_p9, %p1224_p13 }
 0x268   : > { %p1227_p1 = pnand %p1226_p0, %p1220_p10 }
 0x26a   : > { %1230 = shalt.err (!%p1227_p1)
}
 0x26b   : > { %s1289_s11 = smov 128   ;;  %s1290_s27 = smov 8  }
 0x26c   : > { %1065 = dma.vmem_to_hbm [thread:$0]  (%p1414_p11), %s1585_s15, 2048, %s1583_s18, %s859_s19, %s1289_s11, %s1289_s11, %s1290_s27  }
 0x26d PF: > { %p1082_p2 = scmp.ge.s32.totalorder %s1275_s25, 2  ;;  %s887_s12 = sand.u32 1, %s1263_s22  }
 0x26e   : > { %p1652_p3 = scmp.ne.s32.totalorder %s1638_s28, 0  ;;  %s888_s14 = scalar_lea.sflag [#allocation7], %s887_s12 }
 0x270   : > { %p1076_p8 = pnand %p1082_p2, %p1652_p3 }
 0x272   : > { %1258 = dma.done.wait (!%p1076_p8), %s888_s14, 2048  }
 0x273   : > { %1260 = vsyncadd (!%p1076_p8), %s888_s14, 4294965248  ;;  %p21_p12 = scmp.ge.s32.totalorder %s1370_s5, 5   ;;  %s1653_s22 = smov %s1267_s23 }
 0x274   : > { %s1654_s23 = smov %s1271_s24  ;;  %s1655_s24 = smov %s1406_s20 }
 0x275   : > { %s1656_s25 = smov %s1370_s5  ;;  %23 = sbr.rel (!%p21_p12) target bundleno = 18 (0x12), region = 77 }
 0x27c   :  { %893 = vsyncpa [#allocation6], 1 }
 0x27d   :  { %895 = vsyncpa [#allocation6 + $0x1], 1 }
 0x27e   :  { %896 = vsyncpa [#allocation9], 1 }
 0x27f   :  { %897 = vsyncpa [#allocation7], 1 }
 0x280   :  { %899 = vsyncpa [#allocation7 + $0x1], 1 }

</bundles_post_ra>
